<compile_context>
chip_gen: v7x
topology: tpu7x:2x2x1
jax: 0.10.0
libtpu: 0.0.40
codegen_flags: <defaults>
</compile_context>

<pallas_src>
import math

import jax
import jax.numpy as jnp
from jax.experimental import pallas as pl
from jax.experimental.pallas import tpu as pltpu


def make_positional_encoding(d_model: int, max_len: int = 5000) -> jnp.ndarray:
    """Deterministic buffer setup (mirrors the PyTorch __init__).

    For even d_model this is bit-for-bit the PyTorch construction.  The PyTorch
    snippet's odd-d_model branch is shape-inconsistent (the sin block has one
    fewer column than pe[:, 0::2]); here div_term is extended by one entry with
    the same -log(10000)/d_model scaling so odd d_model is well defined.
    """
    position = jnp.arange(max_len, dtype=jnp.float32)[:, None]          # (max_len, 1)
    idx = jnp.arange(0, d_model, 2, dtype=jnp.float32)                  # ceil(d/2)
    div_term = jnp.exp(idx * (-math.log(10000.0) / d_model))
    angles = position * div_term                                        # (max_len, ceil(d/2))
    pe = jnp.zeros((max_len, d_model), dtype=jnp.float32)
    pe = pe.at[:, 0::2].set(jnp.sin(angles))
    pe = pe.at[:, 1::2].set(jnp.cos(angles[:, : d_model // 2]))
    return pe                                                           # (max_len, d_model)


def _add_pe_kernel(x_ref, pe_ref, o_ref):
    # All refs are (TR, C): pure VPU elementwise add, lane-dense store.
    o_ref[...] = (x_ref[...] + pe_ref[...]).astype(o_ref.dtype)


def _target_tile_bytes() -> int:
    """Per-array tile budget.

    v7x (smaller VMEM, ~3.2 TB/s HBM): ~4 MiB tiles so the ~0.35 us fixed
    per-grid-step overhead is amortized; 3 arrays x 2 bufs x 4 MiB = 24 MiB
    stays under the 32 MiB limit / 64 MiB physical VMEM.  v5e/v6e already sit
    near the HBM roofline at 2 MiB tiles, so keep the smaller footprint there.
    """
    try:
        info = pltpu.get_tpu_info()
        if getattr(info, "vmem_capacity_bytes", 128 << 20) <= (64 << 20):
            return 4 * 1024 * 1024
    except Exception:
        pass
    return 2 * 1024 * 1024


def _choose_row_tile(num_rows: int, row_bytes: int, itemsize: int) -> int:
    """Pick a row-tile of ~target bytes, respecting sublane packing multiples."""
    target = _target_tile_bytes()
    sub = max(1, 32 // itemsize)          # 8 (f32), 16 (bf16), 32 (int8)
    tr = max(sub, target // max(1, row_bytes))
    tr = (tr // sub) * sub
    if tr >= num_rows:
        return num_rows                   # full extent — always a legal block shape
    return max(sub, tr)


@jax.jit
def positional_encoding_forward(x: jnp.ndarray, pe: jnp.ndarray) -> jnp.ndarray:
    """y = x + pe[None, :S, :] with the elementwise add done in a Pallas kernel.

    `pe` may be the full (max_len, D) float32 buffer (module semantics) or an
    already-sliced (S, D) buffer in x.dtype (preferred: hoists the slice/cast
    out of the per-call path).
    """
    B, S, D = x.shape
    assert S <= pe.shape[0], f"sequence length {S} exceeds pe max_len {pe.shape[0]}"
    assert pe.shape[-1] == D

    if pe.shape[0] != S or pe.dtype != x.dtype:
        # Done inside the same jit so it fuses; callers can pre-compute this.
        pe = pe[:S, :].astype(x.dtype)

    # Lane-dense view: fold (S, D) into rows of 128 lanes when possible so the
    # output last dim is a multiple of 128 (unmasked vector stores).
    if D % 128 == 0:
        R, C = S, D                       # already lane-dense, no fold needed
    elif (S * D) % 128 == 0:
        R, C = (S * D) // 128, 128
    else:
        R, C = S, D                       # fallback: masked partial stores
    x_rows = x.reshape(B, R, C)
    pe_rows = pe.reshape(R, C)

    itemsize = jnp.dtype(x.dtype).itemsize
    TR = _choose_row_tile(R, C * itemsize, itemsize)
    n_seq_tiles = pl.cdiv(R, TR)

    # Grid order (seq_tiles, batch): batch is the innermost (sequential) axis,
    # so the pe block index (s, 0) is constant across consecutive steps and its
    # DMA is issued only once per seq-tile.
    grid = (n_seq_tiles, B)

    cost = pl.CostEstimate(
        flops=B * S * D,
        transcendentals=0,
        bytes_accessed=(2 * B * S * D + S * D) * itemsize,
    )

    out_rows = pl.pallas_call(
        _add_pe_kernel,
        out_shape=jax.ShapeDtypeStruct((B, R, C), x.dtype),
        grid_spec=pltpu.PrefetchScalarGridSpec(
            num_scalar_prefetch=0,
            grid=grid,
            in_specs=[
                # x: one batch row (squeezed) x TR rows x C lanes
                pl.BlockSpec((pl.Squeezed(), TR, C), lambda s, b: (b, s, 0)),
                # pe: depends only on the outer (seq-tile) axis -> DMA dedup
                pl.BlockSpec((TR, C), lambda s, b: (s, 0)),
            ],
            out_specs=pl.BlockSpec((pl.Squeezed(), TR, C), lambda s, b: (b, s, 0)),
        ),
        compiler_params=pltpu.CompilerParams(
            # seq-tiles parallel (shardable across v7x's 2 TCs even at batch=1);
            # batch "arbitrary" so it stays a sequential inner loop per core and
            # the once-per-seq-tile pe fetch is preserved.
            dimension_semantics=("parallel", "arbitrary"),
            vmem_limit_bytes=32 * 1024 * 1024,
        ),
        cost_estimate=cost,
    )(x_rows, pe_rows)

    return out_rows.reshape(B, S, D)


if __name__ == "__main__":
    MAX_LEN = 5000

    # Primary small case consistent with the module: batch=2, seq=8, d_model=32.
    # S*D = 256 -> lane-dense flattened path (C=128).
    B, S, D = 2, 8, 32
    x = jax.random.normal(jax.random.PRNGKey(0), (B, S, D), dtype=jnp.float32)
    pe = make_positional_encoding(D, MAX_LEN)
    y = jax.block_until_ready(positional_encoding_forward(x, pe))
    ref = x + pe[None, :S, :]
    assert y.shape == x.shape and y.dtype == x.dtype
    assert jnp.allclose(y, ref, atol=1e-6, rtol=1e-6)

    # Secondary case exercising the non-flattenable fallback layout + odd d_model.
    B2, S2, D2 = 2, 7, 33
    x2 = jax.random.normal(jax.random.PRNGKey(1), (B2, S2, D2), dtype=jnp.float32)
    pe2 = make_positional_encoding(D2, MAX_LEN)
    y2 = jax.block_until_ready(positional_encoding_forward(x2, pe2))
    ref2 = x2 + pe2[None, :S2, :]
    assert y2.shape == x2.shape and y2.dtype == x2.dtype
    assert jnp.allclose(y2, ref2, atol=1e-6, rtol=1e-6)

    # Third case: bf16 activations, multi-batch (exercises the pe-dedup grid
    # order) and the hoisted pre-sliced/pre-cast pe path.
    B3, S3, D3 = 4, 16, 32
    x3 = jax.random.normal(jax.random.PRNGKey(2), (B3, S3, D3), dtype=jnp.bfloat16)
    pe3 = make_positional_encoding(D3, MAX_LEN)
    pe3_ready = pe3[:S3, :].astype(jnp.bfloat16)        # hoisted once per module
    y3 = jax.block_until_ready(positional_encoding_forward(x3, pe3_ready))
    ref3 = x3 + pe3_ready[None, :, :]
    assert y3.shape == x3.shape and y3.dtype == x3.dtype
    assert jnp.allclose(y3.astype(jnp.float32), ref3.astype(jnp.float32),
                        atol=1e-2, rtol=1e-2)

    print("KERNEL_OK")
</pallas_src>

<mosaic_0001>
module attributes {stable_mosaic.version = 11 : i64} {
  func.func @_add_pe_kernel(%arg0: i32, %arg1: i32, %arg2: memref<1x2x128xf32, #tpu.memory_space<vmem>>, %arg3: memref<2x128xf32, #tpu.memory_space<vmem>>, %arg4: memref<1x2x128xf32, #tpu.memory_space<vmem>>) attributes {dimension_semantics = [#tpu.dimension_semantics<parallel>, #tpu.dimension_semantics<arbitrary>], iteration_bounds = array<i64: 1, 2>, scalar_prefetch = 0 : i64, scratch_operands = 0 : i64, tpu.core_type = #tpu.core_type<tc>, window_params = [{transform_indices = @transform_0, window_bounds = array<i64: 1, 2, 128>}, {transform_indices = @transform_1, window_bounds = array<i64: 2, 128>}, {transform_indices = @transform_2, window_bounds = array<i64: 1, 2, 128>}]} {
    %c0 = arith.constant 0 : index
    %c0_0 = arith.constant 0 : index
    %c0_1 = arith.constant 0 : index
    %0 = vector.load %arg2[%c0, %c0_0, %c0_1] : memref<1x2x128xf32, #tpu.memory_space<vmem>>, vector<1x2x128xf32>
    %1 = vector.shape_cast %0 : vector<1x2x128xf32> to vector<2x128xf32>
    %c0_2 = arith.constant 0 : index
    %c0_3 = arith.constant 0 : index
    %2 = vector.load %arg3[%c0_2, %c0_3] : memref<2x128xf32, #tpu.memory_space<vmem>>, vector<2x128xf32>
    %3 = arith.addf %1, %2 : vector<2x128xf32>
    %c0_4 = arith.constant 0 : index
    %c0_5 = arith.constant 0 : index
    %c0_6 = arith.constant 0 : index
    %4 = vector.load %arg4[%c0_4, %c0_5, %c0_6] : memref<1x2x128xf32, #tpu.memory_space<vmem>>, vector<1x2x128xf32>
    %5 = vector.shape_cast %4 : vector<1x2x128xf32> to vector<2x128xf32>
    %6 = vector.shape_cast %3 : vector<2x128xf32> to vector<1x2x128xf32>
    tpu.vector_store %arg4[%c0_4, %c0_5, %c0_6], %6 {strides = array<i32>} : memref<1x2x128xf32, #tpu.memory_space<vmem>>, vector<1x2x128xf32>,
    return
  }
  func.func @transform_0(%arg0: i32, %arg1: i32) -> (i32, i32, i32) {
    %c0_i32 = arith.constant 0 : i32
    %c0_i32_0 = arith.constant 0 : i32
    return %arg1, %arg0, %c0_i32 : i32, i32, i32
  }
  func.func @transform_1(%arg0: i32, %arg1: i32) -> (i32, i32) {
    %c0_i32 = arith.constant 0 : i32
    %c0_i32_0 = arith.constant 0 : i32
    return %arg0, %c0_i32 : i32, i32
  }
  func.func @transform_2(%arg0: i32, %arg1: i32) -> (i32, i32, i32) {
    %c0_i32 = arith.constant 0 : i32
    %c0_i32_0 = arith.constant 0 : i32
    return %arg1, %arg0, %c0_i32 : i32, i32, i32
  }
}

</mosaic_0001>

<bundles_post_ra>
// kernel: positional_encoding_forward.1
= control target key start
LH: loop header
LB: loop body
LE: loop exit
PB: predicated region body
PF: predicated region fallthrough
CT: control target
= control target key end

     0   :  { %s354_s9 = smov 0   ;;  %s331_s10 = smov 0   ;;  %s368_s0 = inlined_call_operand.vmem [shape: f32[2,2,128], index: 0, kind: input, shape index: {}]   ;;  %s369_s1 = inlined_call_operand.vmem [shape: f32[2,128], index: 1, kind: input, shape index: {}]   ;;  %s370_s2 = inlined_call_operand.vmem [shape: f32[2,2,128], index: 2, kind: output, shape index: {}]  }
   0x1   :  { %s335_s11 = smov 0  }
   0x2 LB: > { %s21_s12 = sadd.s32 1, %s333_s10  ;;  %p286_p0 = scmp.ge.s32.totalorder %s337_s11, 1  ;;  %s337_s11 = sphi %s335_s11, %s12_s11   ;;  %s333_s10 = sphi %s331_s10, %s332_s10   ;;  %s329_s9 = sphi %s354_s9, %s371_s9  }
   0x3   : > { %p22_p1 = scmp.ge.s32.totalorder %s21_s12, 2  ;;  %p139_p2 = scmp.lt.s32.totalorder %s337_s11, 3 }
   0x5   : > { %s373_s12 = smov (%p22_p1, %s21_s12), 0  ;;  %p140_p3 = pnand %p286_p0, %p139_p2 }
   0x6   : > { %p169_p4 = scmp.lt.s32.totalorder (!%p140_p3), %s329_s9, 1  ;;  %v188_v0 = vld [vmem:[%s369_s1] sm:$0x3] (!%p140_p3) }
   0x7   : > { %143 = sbr.rel (%p140_p3) target bundleno = 21 (0x15), region = 28 }
   0xe   : > { %s375_s9 = smov (!%p169_p4, %s329_s9), 1 }
   0xf   : > { %s287_s13 = sshll.u32 %s375_s9, 1 }
  0x10   : > { %s175_s18 = scalar_lea.vmem %s368_s0, %s287_s13  ;;  %s186_s21 = scalar_lea.vmem %s370_s2, %s287_s13 }
  0x11   : > { %v187_v1 = vld [vmem:[%s175_s18] sm:$0x3] }
  0x12   : > { %v189_v2 = vadd.f32 %v188_v0, %v187_v1 }
  0x14   : > { %190 = vst [vmem:[%s186_s21] sm:$0x3] %v189_v2 }
  0x15 PF: > { %s12_s11 = sadd.s32 1, %s337_s11   ;;  %s371_s9 = smov %s333_s10 }
  0x16   : > { %p9_p5 = scmp.ge.s32.totalorder %s12_s11, 4   ;;  %s332_s10 = smov %s373_s12  }
  0x18   :  { %11 = sbr.rel (!%p9_p5) target bundleno = 2 (0x2), region = 61 }

</bundles_post_ra>
